<compile_context>
chip_gen: v5e
topology: v5e:2x2
jax: 0.10.0
libtpu: 0.0.40
codegen_flags: <defaults>
</compile_context>

<pallas_src>
import jax
import jax.numpy as jnp
from jax.experimental import pallas as pl
from jax.experimental.pallas import tpu as pltpu


def _round_up(x, m):
    return ((x + m - 1) // m) * m


def _cdiv(a, b):
    return (a + b - 1) // b


def _supports_bf16_vpu():
    """True on TPU generations with native bf16 VPU/EUP (v6e, v7x)."""
    try:
        kind = jax.devices()[0].device_kind.lower()
    except Exception:
        return False
    for old in ("v2", "v3", "v4", "v5"):
        if old in kind:
            return False
    return ("v6" in kind) or ("v7" in kind)


def _make_kernel(n_hidden, tanh_dtype):
    """Kernel for one batch tile: n_hidden x (Linear+Tanh) then Linear -> (1, TILE_B).

    All tensors are feature-major: x is (features, TILE_B), weights are the
    PyTorch (out, in) layout, so every matmul is W @ x and every elementwise
    op is lane-dense.
    """

    def kernel(*refs):
        x_ref = refs[0]
        out_ref = refs[-1]
        p_refs = refs[1:-1]  # [w1, b1, w2, b2, ..., w_out, b_out(SMEM)]

        x = x_ref[...]  # (in_features, TILE_B) f32
        for li in range(n_hidden):
            w = p_refs[2 * li][...]        # (h, in) -- VMEM resident
            b = p_refs[2 * li + 1][...]    # (h, 1)  -- VMEM resident
            h = jnp.dot(w, x, preferred_element_type=jnp.float32)  # (h, TILE_B)
            # Bias add in f32; tanh in bf16 on v6e/v7x (native EUP), f32 on v5e.
            x = jnp.tanh((h + b).astype(tanh_dtype)).astype(jnp.float32)

        w_out = p_refs[2 * n_hidden][...]   # (1, h_last)
        b_out = p_refs[2 * n_hidden + 1]    # (1,) scalar in SMEM
        out = jnp.dot(w_out, x, preferred_element_type=jnp.float32)  # (1, TILE_B)
        out_ref[...] = (out + b_out[0]).astype(out_ref.dtype)

    return kernel


def _choose_tile_b(batch, tile_b):
    tile_b = max(128, _round_up(tile_b, 128))
    if batch <= 256:
        # Tiny batch: one lane-aligned tile (grid-step overhead would dominate).
        return _round_up(batch, 128)
    # Keep >= 2 tiles so v7x's two TensorCores both get work on the "parallel"
    # grid axis, but never exceed the requested (VMEM-bounded) tile size.
    half = _round_up(_cdiv(batch, 2), 128)
    return min(tile_b, half)


def mlp_reward_forward(obs, params, *, tile_b=4096, tanh_dtype=None):
    """Forward pass. `params` is a list of (W, b) with W in torch (out, in) layout.

    Returns rewards of shape (batch,), matching `torch.squeeze(out, 1)`.
    """
    if tanh_dtype is None:
        tanh_dtype = jnp.bfloat16 if _supports_bf16_vpu() else jnp.float32

    batch, obs_dim = obs.shape
    n_hidden = len(params) - 1

    tile_b = _choose_tile_b(batch, tile_b)
    padded = _round_up(batch, tile_b)
    num_tiles = padded // tile_b

    # Feature-major obs: (obs_dim, padded_batch). One wrapper-side transpose;
    # callers that already store obs feature-major can skip it.
    obs_t = jnp.asarray(obs, jnp.float32).T
    if padded != batch:
        obs_t = jnp.pad(obs_t, ((0, 0), (0, padded - batch)))

    # Assemble kernel operands + specs: streamed obs tile, then resident params.
    operands = [obs_t]
    in_specs = [pl.BlockSpec((obs_dim, tile_b), lambda i: (0, i))]

    def _resident(shape):
        # Constant block index across the batch grid -> stays in VMEM,
        # no re-DMA per grid step.
        return pl.BlockSpec(shape, lambda i: (0, 0))

    for (w, b) in params[:-1]:
        w = jnp.asarray(w, jnp.float32)            # (out, in) torch layout
        b = jnp.asarray(b, jnp.float32).reshape(-1, 1)  # (out, 1) -> lane-broadcast
        operands += [w, b]
        in_specs += [_resident(w.shape), _resident(b.shape)]

    w_out, b_out = params[-1]
    w_out = jnp.asarray(w_out, jnp.float32)        # (1, h_last)
    b_out = jnp.asarray(b_out, jnp.float32).reshape(1)
    operands += [w_out, b_out]
    in_specs += [_resident(w_out.shape),
                 pl.BlockSpec(memory_space=pltpu.MemorySpace.SMEM)]

    out = pl.pallas_call(
        _make_kernel(n_hidden, tanh_dtype),
        out_shape=jax.ShapeDtypeStruct((1, padded), jnp.float32),
        grid=(num_tiles,),
        in_specs=in_specs,
        out_specs=pl.BlockSpec((1, tile_b), lambda i: (0, i)),  # lane-dense row
        compiler_params=pltpu.CompilerParams(
            dimension_semantics=("parallel",)),
    )(*operands)

    return out.reshape(padded)[:batch]  # squeeze(dim=1) equivalent -> (batch,)


def init_params(key, obs_dim, hiddens):
    """Deterministic init mimicking nn.Linear defaults, torch (out, in) layout."""
    sizes = [obs_dim] + list(hiddens) + [1]
    params = []
    for i in range(len(sizes) - 1):
        fan_in, fan_out = sizes[i], sizes[i + 1]
        key, kw, kb = jax.random.split(key, 3)
        bound = 1.0 / (fan_in ** 0.5)
        w = jax.random.uniform(kw, (fan_out, fan_in), jnp.float32, -bound, bound)
        b = jax.random.uniform(kb, (fan_out,), jnp.float32, -bound, bound)
        params.append((w, b))
    return params


if __name__ == "__main__":
    obs_dim = 16
    hiddens = [32, 32]
    batch = 300      # not a multiple of 128 -> exercises padding + multi-tile grid

    key = jax.random.PRNGKey(0)
    key, k_obs = jax.random.split(key)
    obs = jax.random.normal(k_obs, (batch, obs_dim), jnp.float32)
    params = init_params(key, obs_dim, hiddens)

    # Pure-JAX reference (same math, torch (out, in) weight layout).
    ref = obs
    for w, b in params[:-1]:
        ref = jnp.tanh(ref @ w.T + b[None, :])
    w_out, b_out = params[-1]
    ref = jnp.squeeze(ref @ w_out.T + b_out[None, :], axis=1)

    # f32 tanh path with a small tile -> multi-step grid; tight tolerance.
    rewards = mlp_reward_forward(obs, params, tile_b=128,
                                 tanh_dtype=jnp.float32)
    jax.block_until_ready(rewards)
    assert rewards.shape == (batch,)
    assert jnp.allclose(rewards, ref, atol=1e-4, rtol=1e-4), "f32 mismatch vs reference"

    # Auto path: default large tile; bf16 tanh on v6e/v7x, f32 elsewhere.
    rewards_auto = mlp_reward_forward(obs, params)
    jax.block_until_ready(rewards_auto)
    assert rewards_auto.shape == (batch,)
    assert jnp.allclose(rewards_auto, ref, atol=2e-2, rtol=2e-2), "auto-path drift too large"

    print("KERNEL_OK")
</pallas_src>

<mosaic_0001>
module attributes {stable_mosaic.version = 11 : i64} {
  func.func @kernel(%arg0: i32, %arg1: memref<16x128xf32, #tpu.memory_space<vmem>>, %arg2: memref<32x16xf32, #tpu.memory_space<vmem>>, %arg3: memref<32x1xf32, #tpu.memory_space<vmem>>, %arg4: memref<32x32xf32, #tpu.memory_space<vmem>>, %arg5: memref<32x1xf32, #tpu.memory_space<vmem>>, %arg6: memref<1x32xf32, #tpu.memory_space<vmem>>, %arg7: memref<1xf32, #tpu.memory_space<smem>>, %arg8: memref<1x128xf32, #tpu.memory_space<vmem>>) attributes {dimension_semantics = [#tpu.dimension_semantics<parallel>], iteration_bounds = array<i64: 3>, scalar_prefetch = 0 : i64, scratch_operands = 0 : i64, tpu.core_type = #tpu.core_type<tc>, window_params = [{transform_indices = @transform_0, window_bounds = array<i64: 16, 128>}, {pipeline_mode = #tpu.pipeline_mode<synchronous>, transform_indices = @transform_1, window_bounds = array<i64: 32, 16>}, {pipeline_mode = #tpu.pipeline_mode<synchronous>, transform_indices = @transform_2, window_bounds = array<i64: 32, 1>}, {pipeline_mode = #tpu.pipeline_mode<synchronous>, transform_indices = @transform_3, window_bounds = array<i64: 32, 32>}, {pipeline_mode = #tpu.pipeline_mode<synchronous>, transform_indices = @transform_4, window_bounds = array<i64: 32, 1>}, {pipeline_mode = #tpu.pipeline_mode<synchronous>, transform_indices = @transform_5, window_bounds = array<i64: 1, 32>}, {transform_indices = @transform_6, window_bounds = array<i64: 1>}, {transform_indices = @transform_7, window_bounds = array<i64: 1, 128>}]} {
    %c0 = arith.constant 0 : index
    %c0_0 = arith.constant 0 : index
    %0 = vector.load %arg1[%c0, %c0_0] : memref<16x128xf32, #tpu.memory_space<vmem>>, vector<16x128xf32>
    %c0_1 = arith.constant 0 : index
    %c0_2 = arith.constant 0 : index
    %1 = vector.load %arg2[%c0_1, %c0_2] : memref<32x16xf32, #tpu.memory_space<vmem>>, vector<32x16xf32>
    %c0_3 = arith.constant 0 : index
    %c0_4 = arith.constant 0 : index
    %2 = vector.load %arg3[%c0_3, %c0_4] : memref<32x1xf32, #tpu.memory_space<vmem>>, vector<32x1xf32>
    %cst = arith.constant dense<0.000000e+00> : vector<32x128xf32>
    %3 = tpu.matmul %1, %0, %cst {dimension_numbers = #tpu.dot_dimension_numbers<[1], [0], [0], [1], [0, 0, 1, 1], [], []>} : vector<32x16xf32>, vector<16x128xf32>, vector<32x128xf32> -> vector<32x128xf32>
    %4 = vector.broadcast %2 : vector<32x1xf32> to vector<32x128xf32>
    %5 = arith.addf %3, %4 : vector<32x128xf32>
    %6 = math.tanh %5 : vector<32x128xf32>
    %c0_5 = arith.constant 0 : index
    %c0_6 = arith.constant 0 : index
    %7 = vector.load %arg4[%c0_5, %c0_6] : memref<32x32xf32, #tpu.memory_space<vmem>>, vector<32x32xf32>
    %c0_7 = arith.constant 0 : index
    %c0_8 = arith.constant 0 : index
    %8 = vector.load %arg5[%c0_7, %c0_8] : memref<32x1xf32, #tpu.memory_space<vmem>>, vector<32x1xf32>
    %cst_9 = arith.constant dense<0.000000e+00> : vector<32x128xf32>
    %9 = tpu.matmul %7, %6, %cst_9 {dimension_numbers = #tpu.dot_dimension_numbers<[1], [0], [0], [1], [0, 0, 1, 1], [], []>} : vector<32x32xf32>, vector<32x128xf32>, vector<32x128xf32> -> vector<32x128xf32>
    %10 = vector.broadcast %8 : vector<32x1xf32> to vector<32x128xf32>
    %11 = arith.addf %9, %10 : vector<32x128xf32>
    %12 = math.tanh %11 : vector<32x128xf32>
    %c0_10 = arith.constant 0 : index
    %c0_11 = arith.constant 0 : index
    %13 = vector.load %arg6[%c0_10, %c0_11] : memref<1x32xf32, #tpu.memory_space<vmem>>, vector<1x32xf32>
    %cst_12 = arith.constant dense<0.000000e+00> : vector<1x128xf32>
    %14 = tpu.matmul %13, %12, %cst_12 {dimension_numbers = #tpu.dot_dimension_numbers<[1], [0], [0], [1], [0, 0, 1, 1], [], []>} : vector<1x32xf32>, vector<32x128xf32>, vector<1x128xf32> -> vector<1x128xf32>
    %c0_13 = arith.constant 0 : index
    %15 = memref.load %arg7[%c0_13] : memref<1xf32, #tpu.memory_space<smem>>
    %16 = vector.broadcast %15 : f32 to vector<1x128xf32>
    %17 = arith.addf %14, %16 : vector<1x128xf32>
    %c0_14 = arith.constant 0 : index
    %c0_15 = arith.constant 0 : index
    %18 = vector.load %arg8[%c0_14, %c0_15] : memref<1x128xf32, #tpu.memory_space<vmem>>, vector<1x128xf32>
    tpu.vector_store %arg8[%c0_14, %c0_15], %17 {strides = array<i32>} : memref<1x128xf32, #tpu.memory_space<vmem>>, vector<1x128xf32>,
    return
  }
  func.func @transform_0(%arg0: i32) -> (i32, i32) {
    %c0_i32 = arith.constant 0 : i32
    %c0_i32_0 = arith.constant 0 : i32
    return %c0_i32, %arg0 : i32, i32
  }
  func.func @transform_1(%arg0: i32) -> (i32, i32) {
    %c0_i32 = arith.constant 0 : i32
    %c0_i32_0 = arith.constant 0 : i32
    %c0_i32_1 = arith.constant 0 : i32
    return %c0_i32, %c0_i32_0 : i32, i32
  }
  func.func @transform_2(%arg0: i32) -> (i32, i32) {
    %c0_i32 = arith.constant 0 : i32
    %c0_i32_0 = arith.constant 0 : i32
    %c0_i32_1 = arith.constant 0 : i32
    return %c0_i32, %c0_i32_0 : i32, i32
  }
  func.func @transform_3(%arg0: i32) -> (i32, i32) {
    %c0_i32 = arith.constant 0 : i32
    %c0_i32_0 = arith.constant 0 : i32
    %c0_i32_1 = arith.constant 0 : i32
    return %c0_i32, %c0_i32_0 : i32, i32
  }
  func.func @transform_4(%arg0: i32) -> (i32, i32) {
    %c0_i32 = arith.constant 0 : i32
    %c0_i32_0 = arith.constant 0 : i32
    %c0_i32_1 = arith.constant 0 : i32
    return %c0_i32, %c0_i32_0 : i32, i32
  }
  func.func @transform_5(%arg0: i32) -> (i32, i32) {
    %c0_i32 = arith.constant 0 : i32
    %c0_i32_0 = arith.constant 0 : i32
    %c0_i32_1 = arith.constant 0 : i32
    return %c0_i32, %c0_i32_0 : i32, i32
  }
  func.func @transform_6(%arg0: i32) -> i32 {
    %c0_i32 = arith.constant 0 : i32
    %c0_i32_0 = arith.constant 0 : i32
    return %c0_i32 : i32
  }
  func.func @transform_7(%arg0: i32) -> (i32, i32) {
    %c0_i32 = arith.constant 0 : i32
    %c0_i32_0 = arith.constant 0 : i32
    return %c0_i32, %arg0 : i32, i32
  }
}

</mosaic_0001>

<bundles_post_ra>
// kernel: tpu_custom_call.1
= control target key start
LH: loop header
LB: loop body
LE: loop exit
PB: predicated region body
PF: predicated region fallthrough
CT: control target
= control target key end

     0   :  { %s914_s0 = inlined_call_operand.vmem [shape: f32[16,384], index: 0, kind: input, shape index: {}]   ;;  %s915_s1 = inlined_call_operand.vmem [shape: f32[32,16], index: 1, kind: input, shape index: {}]   ;;  %s916_s2 = inlined_call_operand.vmem [shape: f32[32,1], index: 2, kind: input, shape index: {}]   ;;  %s917_s3 = inlined_call_operand.vmem [shape: f32[32,32], index: 3, kind: input, shape index: {}]   ;;  %s918_s4 = inlined_call_operand.vmem [shape: f32[32,1], index: 4, kind: input, shape index: {}]   ;;  %s919_s5 = inlined_call_operand.vmem [shape: f32[1,32], index: 5, kind: input, shape index: {}]   ;;  %s920_s6 = inlined_call_operand.<no memory space> [shape: f32[1], index: 6, kind: input, shape index: {}]   ;;  %s921_s7 = inlined_call_operand.hbm [shape: f32[1,384], index: 7, kind: output, shape index: {}]  }
   0x1   :  { %12 = sst [smem:[#allocation2]] %s920_s6 }
   0x2   :  { %13 = vsyncpa [#allocation5], 0 }
   0x3   :  { %15 = vsyncpa [#allocation5 + $0x1], 0  ;;  %s762_s26 = smov 0   ;;  %s764_s27 = smov 0  }
   0x4   :  { %s766_s28 = smov 0   ;;  %s768_s29 = smov 0  }
   0x5 LB: > { %s566_s6 = sadd.s32 4294967295, %s716_s29   ;;  %s567_s30 = sadd.s32 4294967294, %s716_s29   ;;  %s716_s29 = sphi %s768_s29, %s927_s29   ;;  %s712_s28 = sphi %s766_s28, %s926_s28   ;;  %s708_s27 = sphi %s764_s27, %s925_s27   ;;  %s704_s26 = sphi %s762_s26, %s924_s26  }
   0x6   : > { %s785_s8 = sadd.s32 1, %s716_s29   ;;  %s28_s9 = sadd.s32 1, %s712_s28 }
   0x7   : > { %s25_s10 = ssub.s32 %s716_s29, %s785_s8  ;;  %p35_p0 = scmp.ne.s32.totalorder %s712_s28, %s708_s27 }
   0x8   : > { %p26_p1 = scmp.eq.s32.totalorder %s25_s10, 0  ;;  %p36_p2 = scmp.eq.s32.totalorder %s716_s29, 0 }
   0x9   : > { %p191_p3 = scmp.eq.s32.totalorder %s566_s6, 2  ;;  %p196_p4 = scmp.ne.s32.totalorder %s708_s27, %s704_s26 }
   0xa   : > { %s798_s11 = scalar_select %p26_p1, %s712_s28, %s28_s9  }
   0xb   : > { %p37_p5 = por %p36_p2, %p35_p0  ;;  %p800_p6 = por %p191_p3, %p35_p0 }
   0xc   : > { %p197_p7 = scmp.eq.s32.totalorder %s567_s30, 2  ;;  %p569_p9 = scmp.ge.s32.totalorder %s716_s29, 3 }
   0xe   : > { %p804_p8 = por %p197_p7, %p196_p4  ;;  %231 = sbr.rel (%p569_p9) target bundleno = 25 (0x19), region = 40 }
  0x13   : > { %234 = sbr.rel (!%p37_p5) target bundleno = 25 (0x19), region = 44  ;;  %s236_s14 = sand.u32 (%p37_p5), 1, %s712_s28  }
  0x14   : > { %s571_s15 = sshll.u32 (%p37_p5), %s716_s29, 3  ;;  %s570_s16 = sshll.u32 (%p37_p5), %s236_s14, 4 }
  0x15   : > { %s240_s19 = scalar_lea.vmem (%p37_p5), %s914_s0, %s571_s15  ;;  %s238_s20 = scalar_lea.vmem (%p37_p5), [#allocation3], %s570_s16 }
  0x16   : > { %v271_v0 = vld [vmem:[%s240_s19] sm:$0xff] (%p37_p5)  ;;  %v273_v1 = vld [vmem:[%s240_s19 + $0x18] sm:$0xff] (%p37_p5) }
  0x17   : > { %272 = vst [vmem:[%s238_s20] sm:$0xff] (%p37_p5), %v271_v0 }
  0x18   : > { %274 = vst [vmem:[%s238_s20 + $0x8] sm:$0xff] %v273_v1 }
  0x19 PF: > { %p572_p10 = scmp.ge.s32.totalorder %s716_s29, 1  ;;  %p279_p11 = scmp.lt.s32.totalorder %s716_s29, 4 }
  0x1b   : > { %p280_p12 = pnand %p572_p10, %p279_p11 }
  0x1c   : > { %s817_s21 = sand.u32 (!%p280_p12), 1, %s708_s27   ;;  %s467_s15 = sld [smem:[#allocation2]] (!%p280_p12) }
  0x1d   : > { %283 = sbr.rel (%p280_p12) target bundleno = 490 (0x1ea), region = 82  ;;  %s573_s30 = sshll.u32 (!%p280_p12), %s817_s21, 4 }
  0x1e   : > { %s288_s9 = scalar_lea.vmem (!%p280_p12), [#allocation3], %s573_s30  ;;  %s502_s18 = scalar_lea.hbm (!%p280_p12), %s921_s7, %s566_s6 }
  0x1f   : > { %s315_s19 = scalar_lea.vmem (!%p280_p12), [#allocation4], %s817_s21  ;;  %s506_s22 = sshll.u32 (!%p280_p12), %s502_s18, 4  ;;  %s507_s22 = int_to_ptr.hbm [resolvable:$true] %s506_s22 }
  0x20   : > { %s504_s20 = sshll.u32 (!%p280_p12), %s315_s19, 4  ;;  %s494_s23 = scalar_lea.sflag (!%p280_p12), [#allocation5], %s817_s21  ;;  %s505_s20 = int_to_ptr.vmem [resolvable:$true] %s504_s20 }
  0x21   : > { %s668_s24 = sshra.s32 (!%p280_p12), %s507_s22, 4  ;;  %s674_s6 = scalar_lea.hbm (!%p280_p12), %s921_s7, 3  ;;  %s669_s24 = int_to_ptr.hbm [resolvable:$true] %s668_s24 }
  0x22   : > { %v325_v2 = vld [vmem:[%s916_s2 + $0x18] sm:$0xff]  ;;  %v323_v3 = vld [vmem:[%s916_s2 + $0x8] sm:$0xff]  ;;  %v718_v4 = vmov 0   ;;  %v316_v6 = vld [vmem:[%s288_s9] sm:$0xff]  ;;  %vm346_vm0 = vcmask 130048   ;;  %vm420_vm1 = vcmask 261120   ;;  %v468_v54 = vstv %s467_s15  ;;  %p675_p2 = scmp.lt.s32.totalorder %s669_s24, %s921_s7 }
  0x23   : > { %636 = vset.pattern.permute.xlu1 %v718_v4  ;;  %635 = vset.pattern.permute.xlu0 %v718_v4  ;;  %v317_v5 = vld [vmem:[%s288_s9 + $0x8] sm:$0xff]  ;;  %v318_v7 = vld [vmem:[%s915_s1] sm:$0xff]  ;;  %v324_v9 = vld [vmem:[%s916_s2 + $0x10] sm:$0xff]  ;;  %s670_s25 = scalar_lea.hbm %s669_s24, 1 }
  0x24   : > { %343 = vperm.xlu0 %635, %v325_v2   ;;  %333 = vperm.xlu1 %636, %v323_v3   ;;  %v321_v8 = vld [vmem:[%s915_s1 + $0x18] sm:$0xff]  ;;  %v322_v10 = vld [vmem:[%s916_s2] sm:$0xff]  ;;  %v319_v11 = vld [vmem:[%s915_s1 + $0x8] sm:$0xff]  ;;  %p671_p13 = scmp.ne.s32.totalorder %s669_s24, %s670_s25  ;;  %p676_p3 = scmp.lt.s32.totalorder %s674_s6, %s670_s25 }
  0x25   : > { %637 = vset.pattern.permute.xlu2 %v718_v4  ;;  %373 = vmatpush.msra.mxu0 %v317_v5  ;;  %v397_v12 = vld [vmem:[%s918_s4 + $0x8] sm:$0xff]  ;;  %v396_v13 = vld [vmem:[%s918_s4] sm:$0xff]  ;;  %v320_v14 = vld [vmem:[%s915_s1 + $0x10] sm:$0xff] }
  0x26   : > { %585 = vmatpush.msra.mxu1 %v317_v5  ;;  %v399_v21 = vld [vmem:[%s918_s4 + $0x18] sm:$0xff]  ;;  %v398_v23 = vld [vmem:[%s918_s4 + $0x10] sm:$0xff]  ;;  %v392_v32 = vld [vmem:[%s917_s3] sm:$0xff]  ;;  %p672_p0 = pnand %p671_p13, %p800_p6  ;;  %p677_p4 = por %p676_p3, %p675_p2 }
  0x27   : > { %374 = vmatpush.msra.mxu0 %v316_v6  ;;  %417 = vperm.xlu2 %637, %v399_v21   ;;  %v393_v34 = vld [vmem:[%s917_s3 + $0x8] sm:$0xff]  ;;  %v394_v35 = vld [vmem:[%s917_s3 + $0x10] sm:$0xff]  ;;  %v395_v36 = vld [vmem:[%s917_s3 + $0x18] sm:$0xff] }
  0x28   : > { %586 = vmatpush.msra.mxu1 %v316_v6  ;;  %574 = vmatmul.msk.f32.vlgmr.msra.gmra.mxu0 %vm346_vm0, %v318_v7  ;;  %v466_v52 = vld [vmem:[%s919_s5] sm:$0x1]  ;;  %p673_p1 = pneg %p672_p0 }
  0x29   : > { %577 = vmatmul.msk.f32.vlgmr.msra.gmra.mxu1 %vm346_vm0, %v321_v8 }
  0x2a   : > { %p678_p5 = pnand %p677_p4, %p673_p1 }
  0x2c   : > { %338 = vperm.xlu0 %635, %v324_v9   ;;  %328 = vperm.xlu1 %636, %v322_v10  }
  0x2f   : > { %412 = vperm.xlu2 %637, %v398_v23  }
  0x30   : > { %575 = vmatmul.msk.f32.gmra.mxu0 %vm346_vm0, %v319_v11 }
  0x34   : > { %407 = vperm.xlu0 %635, %v397_v12   ;;  %402 = vperm.xlu1 %636, %v396_v13  }
  0x38   : > { %576 = vmatmul.msk.f32.gmra.mxu0 %vm346_vm0, %v320_v14 }
  0x81   : > { %v418_v37 = vpop.permute.xlu2 %417 }
  0x89   : > { %v413_v39 = vpop.permute.xlu2 %412 }
  0x96   : > { %v344_v16 = vpop.permute.xlu0 %343  ;;  %v334_v19 = vpop.permute.xlu1 %333 }
  0x9e   : > { %v339_v24 = vpop.permute.xlu0 %338  ;;  %v329_v25 = vpop.permute.xlu1 %328 }
  0xa5   : > { %v376_v15 = vpop.f32.mrf.mxu0 }
  0xa6   : > { %v385_v17 = vpop.f32.mrf.mxu1  ;;  %v377_v29 = vadd.f32 %v376_v15, %v329_v25  ;;  %v408_v44 = vpop.permute.xlu0 %407 }
  0xa7   : > { %v386_v18 = vadd.f32 %v385_v17, %v344_v16  ;;  %v403_v47 = vpop.permute.xlu1 %402 }
  0xa9   : > { %638 = vtanh.f32 %v386_v18 }
  0xad   : > { %v379_v20 = vpop.f32.mrf.mxu0 }
  0xae   : > { %v380_v27 = vadd.f32 %v379_v20, %v334_v19 }
  0xaf   : > { %v639_v22 = vpop.eup %638 }
  0xb0   : > { %445 = vmatpush.msrb.mxu1 %v639_v22  ;;  %587 = vmatpush.msra.mxu2 %v639_v22 }
  0xb1   : > { %588 = vmatpush.msra.mxu3 %v639_v22 }
  0xb5   : > { %v382_v26 = vpop.f32.mrf.mxu0 }
  0xb6   : > { %v383_v28 = vadd.f32 %v382_v26, %v339_v24 }
  0xb8   : > { %640 = vtanh.f32 %v383_v28 }
  0xb9   : > { %642 = vtanh.f32 %v380_v27 }
  0xba   : > { %644 = vtanh.f32 %v377_v29 }
  0xbe   : > { %v641_v30 = vpop.eup %640 }
  0xbf   : > { %446 = vmatpush.msrb.mxu1 %v641_v30  ;;  %589 = vmatpush.msra.mxu2 %v641_v30  ;;  %v643_v31 = vpop.eup %642 }
  0xc0   : > { %590 = vmatpush.msra.mxu3 %v641_v30  ;;  %v645_v33 = vpop.eup %644 }
  0xc1   : > { %447 = vmatpush.msrb.mxu1 %v643_v31  ;;  %591 = vmatpush.msra.mxu2 %v643_v31 }
  0xc2   : > { %592 = vmatpush.msra.mxu3 %v643_v31 }
  0xc3   : > { %448 = vmatpush.msrb.mxu1 %v645_v33  ;;  %593 = vmatpush.msra.mxu2 %v645_v33 }
  0xc4   : > { %594 = vmatpush.msra.mxu3 %v645_v33  ;;  %578 = vmatmul.msk.f32.vlgmr.msrb.gmra.mxu1 %vm420_vm1, %v392_v32 }
  0xc5   : > { %579 = vmatmul.msk.f32.vlgmr.msra.gmra.mxu2 %vm420_vm1, %v393_v34  ;;  %580 = vmatmul.msk.f32.vlgmr.msra.gmra.mxu3 %vm420_vm1, %v394_v35 }
  0xcd   : > { %581 = vmatmul.msk.f32.gmra.mxu3 %vm420_vm1, %v395_v36 }
 0x141   : > { %v450_v45 = vpop.f32.mrf.mxu1 }
 0x142   : > { %v451_v48 = vadd.f32 %v450_v45, %v403_v47 }
 0x148   : > { %v456_v38 = vpop.f32.mrf.mxu3  ;;  %v453_v40 = vpop.f32.mrf.mxu2 }
 0x149   : > { %v457_v42 = vadd.f32 %v456_v38, %v413_v39  ;;  %v454_v46 = vadd.f32 %v453_v40, %v408_v44 }
 0x150   : > { %v459_v41 = vpop.f32.mrf.mxu3 }
 0x151   : > { %v460_v43 = vadd.f32 %v459_v41, %v418_v37 }
 0x153   : > { %646 = vtanh.f32 %v460_v43 }
 0x154   : > { %648 = vtanh.f32 %v457_v42 }
 0x155   : > { %650 = vtanh.f32 %v454_v46 }
 0x156   : > { %652 = vtanh.f32 %v451_v48 }
 0x159   : > { %v647_v49 = vpop.eup %646 }
 0x15a   : > { %484 = vmatpush.msrb.mxu2 %v647_v49  ;;  %v649_v50 = vpop.eup %648 }
 0x15b   : > { %v651_v51 = vpop.eup %650 }
 0x15c   : > { %485 = vmatpush.msrb.mxu2 %v649_v50  ;;  %v653_v53 = vpop.eup %652 }
 0x15e   : > { %486 = vmatpush.msrb.mxu2 %v651_v51 }
 0x160   : > { %487 = vmatpush.msrb.mxu2 %v653_v53 }
 0x161   : > { %582 = vmatmul.msk.f32.vlgmr.msrb.gmra.mxu2 %vm420_vm1, %v466_v52 }
 0x1e4   : > { %v489_v55 = vpop.f32.mrf.mxu2 }
 0x1e5   : > { %v490_v56 = vadd.f32 %v489_v55, %v468_v54 }
 0x1e7   : > { %492 = vst [vmem:[%s315_s19] sm:$0x1] %v490_v56 }
 0x1e8   : > { %681 = shalt.err (!%p678_p5)
}
 0x1e9   : > { %595 = dma.vmem_to_hbm [thread:$0]  (%p800_p6), %s505_s20, 16, %s507_s22, %s494_s23  }
 0x1ea PF: > { %p601_p7 = scmp.ge.s32.totalorder %s716_s29, 2  ;;  %s518_s21 = sand.u32 1, %s704_s26  }
 0x1eb   : > { %s519_s15 = scalar_lea.sflag [#allocation5], %s518_s21 }
 0x1ec   : > { %p598_p9 = pnand %p601_p7, %p804_p8 }
 0x1ee   : > { %p599_p10 = pneg %p598_p9 }
 0x1f0   : > { %699 = dma.done.wait (%p599_p10), %s519_s15, 16  }
 0x1f1   : > { %701 = vsyncadd (%p599_p10), %s519_s15, 4294967280  ;;  %p18_p11 = scmp.ge.s32.totalorder %s785_s8, 5   ;;  %s924_s26 = smov %s708_s27 }
 0x1f2   : > { %s925_s27 = smov %s712_s28  ;;  %s926_s28 = smov %s798_s11 }
 0x1f3   : > { %s927_s29 = smov %s785_s8  ;;  %20 = sbr.rel (!%p18_p11) target bundleno = 5 (0x5), region = 126 }
 0x1f8   :  { %524 = vsyncpa [#allocation5], 1 }
 0x1f9   :  { %526 = vsyncpa [#allocation5 + $0x1], 1 }

</bundles_post_ra>
